<compile_context>
chip_gen: v7x
topology: tpu7x:2x2x1
jax: 0.10.0
libtpu: 0.0.40
codegen_flags: <defaults>
</compile_context>

<pallas_src>
import functools

import jax
import jax.numpy as jnp
from jax import lax
from jax.experimental import pallas as pl
from jax.experimental.pallas import tpu as pltpu


def _dice_rows_kernel(pred_ref, tgt_ref, inter_ref, denom_ref, *,
                      kpc, n_blk, rows_in_last, has_dups):
    """Fast path: lane-dense (B, block_rows, 128) tiles.

    inter_ref / denom_ref: (1, B, 128) resident lane-wide accumulators (one
    slice per core split).
    """
    k = pl.program_id(1)
    blk = pl.program_id(0) * kpc + k          # global row-block index

    @pl.when(k == 0)
    def _():
        inter_ref[...] = jnp.zeros_like(inter_ref)
        denom_ref[...] = jnp.zeros_like(denom_ref)

    def accumulate(valid_rows):
        x = pred_ref[...].astype(jnp.float32)
        t = tgt_ref[...].astype(jnp.float32)
        p = jax.nn.sigmoid(x)                 # EUP, off the VPU slot
        if valid_rows is not None:
            # Partial last block only: zero garbage rows before either sum.
            row_i = lax.broadcasted_iota(jnp.int32, p.shape, 1)
            keep = row_i < valid_rows
            p = jnp.where(keep, p, 0.0)
            t = jnp.where(keep, t, 0.0)
        # Sublane (rows) reduction only per step; the cross-lane reduce
        # happens once in the wrapper epilogue.
        inter_ref[0] += jnp.sum(p * t, axis=1)
        denom_ref[0] += jnp.sum(p + t, axis=1)

    if rows_in_last is not None:              # static: last block is partial
        @pl.when(blk == n_blk - 1)
        def _():
            accumulate(rows_in_last)

        @pl.when(blk < n_blk - 1)
        def _():
            accumulate(None)
    elif has_dups:                            # static: skip clamped duplicates
        @pl.when(blk < n_blk)
        def _():
            accumulate(None)
    else:
        accumulate(None)


def _dice_cols_kernel(pred_ref, tgt_ref, inter_ref, denom_ref, *,
                      n_blk, block_cols, n_valid):
    """Ragged fallback: 2-D (B, N) with N % 128 != 0, no host padding.

    pred_ref / tgt_ref: (B, block_cols) tile, block_cols % 128 == 0.
    inter_ref / denom_ref: (B, 128) resident lane-wide accumulators.
    """
    k = pl.program_id(0)
    n_groups = block_cols // 128

    @pl.when(k == 0)
    def _():
        inter_ref[...] = jnp.zeros_like(inter_ref)
        denom_ref[...] = jnp.zeros_like(denom_ref)

    def accumulate(full_groups, tail_lanes):
        x = pred_ref[...].astype(jnp.float32)
        t = tgt_ref[...].astype(jnp.float32)
        p = jax.nn.sigmoid(x)
        b = p.shape[0]
        pi = jnp.zeros((b, 128), jnp.float32)
        pd = jnp.zeros((b, 128), jnp.float32)
        for i in range(full_groups):          # static, 128-lane-aligned slices
            ps = p[:, i * 128:(i + 1) * 128]
            ts = t[:, i * 128:(i + 1) * 128]
            pi = pi + ps * ts
            pd = pd + ps + ts
        if tail_lanes:                        # static: single ragged group
            i = full_groups
            ps = p[:, i * 128:(i + 1) * 128]
            ts = t[:, i * 128:(i + 1) * 128]
            lane = lax.broadcasted_iota(jnp.int32, ps.shape, 1)
            keep = lane < tail_lanes
            pi = pi + jnp.where(keep, ps, 0.0) * jnp.where(keep, ts, 0.0)
            pd = pd + jnp.where(keep, ps + ts, 0.0)
        inter_ref[...] += pi
        denom_ref[...] += pd

    last_valid = n_valid - (n_blk - 1) * block_cols
    if n_blk > 1:
        @pl.when(k < n_blk - 1)
        def _():
            accumulate(n_groups, 0)

    @pl.when(k == n_blk - 1)
    def _():
        accumulate(last_valid // 128, last_valid % 128)


def _pick_block_rows(B, rows, itembytes, budget_bytes, block_rows):
    if block_rows is None:
        per_row = 2 * B * 128 * itembytes     # 2 pipeline buffers, both inputs
        block_rows = max(8, budget_bytes // per_row)
    if block_rows >= rows:
        return rows                            # full dim: no partial block
    return max(8, block_rows - block_rows % 8)


def dice_loss(pred, target, *, smooth=1e-6, block_rows=None, core_splits=1,
              vmem_budget_bytes=20 * 1024 * 1024):
    """Dice loss matching the PyTorch DiceLoss.forward.  Returns scalar f32."""
    assert pred.shape == target.shape
    B = pred.shape[0]
    pred2 = pred.reshape(B, -1)                # metadata-only reshape
    tgt2 = target.reshape(B, -1)
    n = pred2.shape[1]
    itembytes = pred.dtype.itemsize + target.dtype.itemsize
    vmem_limit = 32 * 1024 * 1024

    if n % 128 == 0:
        # ----- fast path: lane-dense (B, rows, 128) layout (free reshape) ---
        rows = n // 128
        pred3 = pred2.reshape(B, rows, 128)
        tgt3 = tgt2.reshape(B, rows, 128)

        br = _pick_block_rows(B, rows, itembytes, vmem_budget_bytes, block_rows)
        n_blk = pl.cdiv(rows, br)
        nc = max(1, min(int(core_splits), n_blk))
        kpc = pl.cdiv(n_blk, nc)
        has_dups = nc * kpc > n_blk
        rows_in_last = rows - (n_blk - 1) * br
        tail = rows_in_last if rows_in_last != br else None

        def in_map(c, k):
            # Clamp duplicate iterations to a valid block (skipped by pl.when).
            return (0, jnp.minimum(c * kpc + k, n_blk - 1), 0)

        kernel = functools.partial(_dice_rows_kernel, kpc=kpc, n_blk=n_blk,
                                   rows_in_last=tail, has_dups=has_dups)
        lead_sem = pltpu.CORE_PARALLEL if nc > 1 else pltpu.ARBITRARY

        inter_p, denom_p = pl.pallas_call(
            kernel,
            out_shape=(jax.ShapeDtypeStruct((nc, B, 128), jnp.float32),
                       jax.ShapeDtypeStruct((nc, B, 128), jnp.float32)),
            grid_spec=pltpu.PrefetchScalarGridSpec(
                num_scalar_prefetch=0,
                grid=(nc, kpc),
                in_specs=[pl.BlockSpec((B, br, 128), in_map),
                          pl.BlockSpec((B, br, 128), in_map)],
                out_specs=(pl.BlockSpec((1, B, 128), lambda c, k: (c, 0, 0)),
                           pl.BlockSpec((1, B, 128), lambda c, k: (c, 0, 0)))),
            compiler_params=pltpu.CompilerParams(
                dimension_semantics=(lead_sem, pltpu.ARBITRARY),
                vmem_limit_bytes=vmem_limit),
        )(pred3, tgt3)
        inter = jnp.sum(inter_p, axis=(0, 2))
        denom = jnp.sum(denom_p, axis=(0, 2))
    else:
        # ----- ragged fallback: 2-D (B, N), no host pad, last block masked ---
        n_pad128 = pl.cdiv(n, 128) * 128
        bc = (vmem_budget_bytes // (2 * B * itembytes)) // 128 * 128
        bc = max(128, min(bc, 128 * 128, n_pad128))   # cap static unroll
        n_blk = pl.cdiv(n, bc)

        kernel = functools.partial(_dice_cols_kernel, n_blk=n_blk,
                                   block_cols=bc, n_valid=n)

        inter_p, denom_p = pl.pallas_call(
            kernel,
            out_shape=(jax.ShapeDtypeStruct((B, 128), jnp.float32),
                       jax.ShapeDtypeStruct((B, 128), jnp.float32)),
            grid_spec=pltpu.PrefetchScalarGridSpec(
                num_scalar_prefetch=0,
                grid=(n_blk,),
                in_specs=[pl.BlockSpec((B, bc), lambda k: (0, k)),
                          pl.BlockSpec((B, bc), lambda k: (0, k))],
                out_specs=(pl.BlockSpec((B, 128), lambda k: (0, 0)),
                           pl.BlockSpec((B, 128), lambda k: (0, 0)))),
            compiler_params=pltpu.CompilerParams(
                dimension_semantics=(pltpu.ARBITRARY,),
                vmem_limit_bytes=vmem_limit),
        )(pred2, tgt2)
        inter = jnp.sum(inter_p, axis=1)
        denom = jnp.sum(denom_p, axis=1)

    dice = (2.0 * inter + smooth) / (denom + smooth)
    return 1.0 - jnp.mean(dice)


def dice_loss_ref(pred, target, smooth=1e-6):
    """Pure-JAX reference matching the PyTorch module."""
    B = pred.shape[0]
    p = jax.nn.sigmoid(pred.astype(jnp.float32)).reshape(B, -1)
    t = target.astype(jnp.float32).reshape(B, -1)
    inter = jnp.sum(p * t, axis=1)
    dice = (2.0 * inter + smooth) / (jnp.sum(p, axis=1) + jnp.sum(t, axis=1) + smooth)
    return 1.0 - jnp.mean(dice)


if __name__ == "__main__":
    key = jax.random.PRNGKey(0)
    k1, k2, k3, k4, k5, k6 = jax.random.split(key, 6)

    # Fast path: C*H*W multiple of 128 (NCHW, matching PyTorch conv inputs).
    B, C, H, W = 2, 4, 16, 16
    pred = jax.random.normal(k1, (B, C, H, W), dtype=jnp.float32)
    target = (jax.random.uniform(k2, (B, C, H, W)) > 0.5).astype(jnp.float32)
    loss = dice_loss(pred, target)
    jax.block_until_ready(loss)
    ref = dice_loss_ref(pred, target)
    assert jnp.allclose(loss, ref, atol=1e-5, rtol=1e-5), (loss, ref)

    # Multi-block fast path with a partial last row-block (tail pl.when branch).
    pred_b = jax.random.normal(k3, (2, 3, 32, 32), dtype=jnp.float32)
    target_b = (jax.random.uniform(k4, (2, 3, 32, 32)) > 0.5).astype(jnp.float32)
    loss_b = dice_loss(pred_b, target_b, block_rows=16)
    ref_b = dice_loss_ref(pred_b, target_b)
    assert jnp.allclose(loss_b, ref_b, atol=1e-5, rtol=1e-5), (loss_b, ref_b)

    # Ragged fallback: flattened size 189 (not a multiple of 128), no host pad.
    pred_r = jax.random.normal(k5, (2, 3, 7, 9), dtype=jnp.float32)
    target_r = (jax.random.uniform(k6, (2, 3, 7, 9)) > 0.5).astype(jnp.float32)
    loss_r = dice_loss(pred_r, target_r)
    ref_r = dice_loss_ref(pred_r, target_r)
    assert jnp.allclose(loss_r, ref_r, atol=1e-5, rtol=1e-5), (loss_r, ref_r)

    jax.block_until_ready((loss, loss_b, loss_r))
    print("KERNEL_OK")
</pallas_src>

<mosaic_0001>
module attributes {stable_mosaic.version = 11 : i64} {
  func.func @_dice_rows_kernel(%arg0: i32, %arg1: i32, %arg2: memref<2x8x128xf32, #tpu.memory_space<vmem>>, %arg3: memref<2x8x128xf32, #tpu.memory_space<vmem>>, %arg4: memref<1x2x128xf32, #tpu.memory_space<vmem>>, %arg5: memref<1x2x128xf32, #tpu.memory_space<vmem>>) attributes {dimension_semantics = [#tpu.dimension_semantics<arbitrary>, #tpu.dimension_semantics<arbitrary>], iteration_bounds = array<i64: 1, 1>, scalar_prefetch = 0 : i64, scratch_operands = 0 : i64, tpu.core_type = #tpu.core_type<tc>, window_params = [{transform_indices = @transform_0, window_bounds = array<i64: 2, 8, 128>}, {transform_indices = @transform_1, window_bounds = array<i64: 2, 8, 128>}, {transform_indices = @transform_2, window_bounds = array<i64: 1, 2, 128>}, {transform_indices = @transform_3, window_bounds = array<i64: 1, 2, 128>}]} {
    %c0_i32 = arith.constant 0 : i32
    %0 = arith.cmpi eq, %arg1, %c0_i32 : i32
    %1 = arith.extui %0 : i1 to i32
    %c0_i32_0 = arith.constant 0 : i32
    %2 = arith.cmpi ne, %1, %c0_i32_0 : i32
    scf.if %2 {
      %cst_20 = arith.constant 0.000000e+00 : f32
      %26 = vector.broadcast %cst_20 : f32 to vector<1x2x128xf32>
      %c0_21 = arith.constant 0 : index
      %c0_22 = arith.constant 0 : index
      %c0_23 = arith.constant 0 : index
      %27 = vector.load %arg4[%c0_21, %c0_22, %c0_23] : memref<1x2x128xf32, #tpu.memory_space<vmem>>, vector<1x2x128xf32>
      tpu.vector_store %arg4[%c0_21, %c0_22, %c0_23], %26 {strides = array<i32>} : memref<1x2x128xf32, #tpu.memory_space<vmem>>, vector<1x2x128xf32>,
      %cst_24 = arith.constant 0.000000e+00 : f32
      %28 = vector.broadcast %cst_24 : f32 to vector<1x2x128xf32>
      %c0_25 = arith.constant 0 : index
      %c0_26 = arith.constant 0 : index
      %c0_27 = arith.constant 0 : index
      %29 = vector.load %arg5[%c0_25, %c0_26, %c0_27] : memref<1x2x128xf32, #tpu.memory_space<vmem>>, vector<1x2x128xf32>
      tpu.vector_store %arg5[%c0_25, %c0_26, %c0_27], %28 {strides = array<i32>} : memref<1x2x128xf32, #tpu.memory_space<vmem>>, vector<1x2x128xf32>,
    } else {
    }
    %c0 = arith.constant 0 : index
    %c0_1 = arith.constant 0 : index
    %c0_2 = arith.constant 0 : index
    %3 = vector.load %arg2[%c0, %c0_1, %c0_2] : memref<2x8x128xf32, #tpu.memory_space<vmem>>, vector<2x8x128xf32>
    %c0_3 = arith.constant 0 : index
    %c0_4 = arith.constant 0 : index
    %c0_5 = arith.constant 0 : index
    %4 = vector.load %arg3[%c0_3, %c0_4, %c0_5] : memref<2x8x128xf32, #tpu.memory_space<vmem>>, vector<2x8x128xf32>
    %5 = arith.negf %3 : vector<2x8x128xf32>
    %6 = math.exp %5 : vector<2x8x128xf32>
    %cst = arith.constant 1.000000e+00 : f32
    %7 = vector.broadcast %cst : f32 to vector<2x8x128xf32>
    %8 = arith.addf %7, %6 : vector<2x8x128xf32>
    %9 = arith.divf %7, %8 : vector<2x8x128xf32>
    %c0_6 = arith.constant 0 : index
    %c0_7 = arith.constant 0 : index
    %c0_8 = arith.constant 0 : index
    %10 = vector.load %arg4[%c0_6, %c0_7, %c0_8] : memref<1x2x128xf32, #tpu.memory_space<vmem>>, vector<1x2x128xf32>
    %11 = vector.shape_cast %10 : vector<1x2x128xf32> to vector<2x128xf32>
    %12 = arith.mulf %9, %4 : vector<2x8x128xf32>
    %cst_9 = arith.constant dense<0.000000e+00> : vector<2x128xf32>
    %13 = vector.multi_reduction <add>, %12, %cst_9 [1] : vector<2x8x128xf32> to vector<2x128xf32>
    %14 = arith.addf %11, %13 : vector<2x128xf32>
    %c0_10 = arith.constant 0 : index
    %c0_11 = arith.constant 0 : index
    %c0_12 = arith.constant 0 : index
    %15 = vector.load %arg4[%c0_10, %c0_11, %c0_12] : memref<1x2x128xf32, #tpu.memory_space<vmem>>, vector<1x2x128xf32>
    %16 = vector.shape_cast %15 : vector<1x2x128xf32> to vector<2x128xf32>
    %17 = vector.shape_cast %14 : vector<2x128xf32> to vector<1x2x128xf32>
    tpu.vector_store %arg4[%c0_10, %c0_11, %c0_12], %17 {strides = array<i32>} : memref<1x2x128xf32, #tpu.memory_space<vmem>>, vector<1x2x128xf32>,
    %c0_13 = arith.constant 0 : index
    %c0_14 = arith.constant 0 : index
    %c0_15 = arith.constant 0 : index
    %18 = vector.load %arg5[%c0_13, %c0_14, %c0_15] : memref<1x2x128xf32, #tpu.memory_space<vmem>>, vector<1x2x128xf32>
    %19 = vector.shape_cast %18 : vector<1x2x128xf32> to vector<2x128xf32>
    %20 = arith.addf %9, %4 : vector<2x8x128xf32>
    %cst_16 = arith.constant dense<0.000000e+00> : vector<2x128xf32>
    %21 = vector.multi_reduction <add>, %20, %cst_16 [1] : vector<2x8x128xf32> to vector<2x128xf32>
    %22 = arith.addf %19, %21 : vector<2x128xf32>
    %c0_17 = arith.constant 0 : index
    %c0_18 = arith.constant 0 : index
    %c0_19 = arith.constant 0 : index
    %23 = vector.load %arg5[%c0_17, %c0_18, %c0_19] : memref<1x2x128xf32, #tpu.memory_space<vmem>>, vector<1x2x128xf32>
    %24 = vector.shape_cast %23 : vector<1x2x128xf32> to vector<2x128xf32>
    %25 = vector.shape_cast %22 : vector<2x128xf32> to vector<1x2x128xf32>
    tpu.vector_store %arg5[%c0_17, %c0_18, %c0_19], %25 {strides = array<i32>} : memref<1x2x128xf32, #tpu.memory_space<vmem>>, vector<1x2x128xf32>,
    return
  }
  func.func @transform_0(%arg0: i32, %arg1: i32) -> (i32, i32, i32) {
    %c1_i32 = arith.constant 1 : i32
    %0 = arith.muli %arg0, %c1_i32 : i32
    %1 = arith.addi %0, %arg1 : i32
    %c0_i32 = arith.constant 0 : i32
    %2 = arith.minsi %1, %c0_i32 : i32
    %c0_i32_0 = arith.constant 0 : i32
    %c0_i32_1 = arith.constant 0 : i32
    %c0_i32_2 = arith.constant 0 : i32
    return %c0_i32_0, %2, %c0_i32_1 : i32, i32, i32
  }
  func.func @transform_1(%arg0: i32, %arg1: i32) -> (i32, i32, i32) {
    %c1_i32 = arith.constant 1 : i32
    %0 = arith.muli %arg0, %c1_i32 : i32
    %1 = arith.addi %0, %arg1 : i32
    %c0_i32 = arith.constant 0 : i32
    %2 = arith.minsi %1, %c0_i32 : i32
    %c0_i32_0 = arith.constant 0 : i32
    %c0_i32_1 = arith.constant 0 : i32
    %c0_i32_2 = arith.constant 0 : i32
    return %c0_i32_0, %2, %c0_i32_1 : i32, i32, i32
  }
  func.func @transform_2(%arg0: i32, %arg1: i32) -> (i32, i32, i32) {
    %c0_i32 = arith.constant 0 : i32
    %c0_i32_0 = arith.constant 0 : i32
    %c0_i32_1 = arith.constant 0 : i32
    return %arg0, %c0_i32, %c0_i32_0 : i32, i32, i32
  }
  func.func @transform_3(%arg0: i32, %arg1: i32) -> (i32, i32, i32) {
    %c0_i32 = arith.constant 0 : i32
    %c0_i32_0 = arith.constant 0 : i32
    %c0_i32_1 = arith.constant 0 : i32
    return %arg0, %c0_i32, %c0_i32_0 : i32, i32, i32
  }
}

</mosaic_0001>

<bundles_post_ra>
// kernel: tpu_custom_call.1
= control target key start
LH: loop header
LB: loop body
LE: loop exit
PB: predicated region body
PF: predicated region fallthrough
CT: control target
= control target key end

     0   :  { %9 = vsyncpa [#allocation3], 0  ;;  %s346_s0 = inlined_call_operand.hbm [shape: f32[2,8,128], index: 0, kind: input, shape index: {}]   ;;  %s347_s1 = inlined_call_operand.hbm [shape: f32[2,8,128], index: 1, kind: input, shape index: {}]   ;;  %s348_s2 = inlined_call_operand.hbm [shape: f32[1,2,128], index: 2, kind: output, shape index: {0}]   ;;  %s349_s3 = inlined_call_operand.hbm [shape: f32[1,2,128], index: 3, kind: output, shape index: {1}]  }
   0x1   :  { %10 = vsyncpa [#allocation6], 0 }
   0x2   :  { %11 = vsyncpa [#allocation4], 0 }
   0x3   :  { %12 = vsyncpa [#allocation9], 0  ;;  %s271_s12 = smov [#allocation2]   ;;  %s175_s16 = scalar_lea.hbm %s346_s0, 256 }
   0x4   :  { %s23_s13 = sshll.u32 %s271_s12, 4  ;;  %p176_p0 = scmp.ne.s32.totalorder %s346_s0, %s175_s16  ;;  %s24_s13 = int_to_ptr.vmem [resolvable:$true] %s23_s13 }
   0x5   :  { %p179_p1 = scmp.lt.u32.totalorder %s175_s16, %s346_s0 }
   0x7   :  { %p181_p2 = pnand %p179_p1, %p176_p0 }
   0x9   :  { %184 = shalt.err (!%p181_p2)
}
   0xa   :  { %s185_s21 = scalar_lea.vmem %s24_s13, 256  ;;  %p190_p4 = scmp.lt.s32.totalorder %s24_s13, %s24_s13 }
   0xb   :  { %p186_p3 = scmp.ne.s32.totalorder %s24_s13, %s185_s21  ;;  %p191_p5 = scmp.lt.s32.totalorder %s185_s21, %s185_s21 }
   0xd   :  { %p192_p6 = por %p191_p5, %p190_p4 }
   0xf   :  { %p193_p7 = pnand %p192_p6, %p186_p3 }
  0x11   :  { %196 = shalt.err (!%p193_p7)
}
  0x12   :  { %s272_s22 = smov 128   ;;  %s273_s23 = smov 8  }
  0x13   :  { %29 = dma.hbm_to_vmem [thread:$0]  %s346_s0, 256, %s24_s13, [#allocation3], %s272_s22, %s272_s22, %s273_s23  }
  0x14   :  { %s274_s26 = smov [#allocation5]   ;;  %s197_s30 = scalar_lea.hbm %s347_s1, 256 }
  0x15   :  { %s40_s27 = sshll.u32 %s274_s26, 4  ;;  %p198_p8 = scmp.ne.s32.totalorder %s347_s1, %s197_s30  ;;  %s41_s27 = int_to_ptr.vmem [resolvable:$true] %s40_s27 }
  0x16   :  { %p201_p9 = scmp.lt.u32.totalorder %s197_s30, %s347_s1 }
  0x18   :  { %p203_p10 = pnand %p201_p9, %p198_p8 }
  0x1a   :  { %206 = shalt.err (!%p203_p10)
}
  0x1b   :  { %s207_s8 = scalar_lea.vmem %s41_s27, 256  ;;  %p212_p12 = scmp.lt.s32.totalorder %s41_s27, %s41_s27 }
  0x1c   :  { %p208_p11 = scmp.ne.s32.totalorder %s41_s27, %s207_s8  ;;  %p213_p13 = scmp.lt.s32.totalorder %s207_s8, %s207_s8 }
  0x1e   :  { %p214_p0 = por %p213_p13, %p212_p12 }
  0x20   :  { %p215_p1 = pnand %p214_p0, %p208_p11 }
  0x22   :  { %218 = shalt.err (!%p215_p1)
}
  0x23   :  { %46 = dma.hbm_to_vmem [thread:$0]  %s347_s1, 256, %s41_s27, [#allocation6], %s272_s22, %s272_s22, %s273_s23  }
  0x24   :  { %263 = dma.done.wait [#allocation3], 256  }
  0x25   :  { %264 = vsyncadd [#allocation3], 4294967040 }
  0x26   :  { %265 = dma.done.wait [#allocation6], 256  }
  0x27   :  { %266 = vsyncadd [#allocation6], 4294967040  ;;  %v275_v0 = vmov 0.0   ;;  %v65_v1 = vld [vmem:[#allocation2] sm:$0xff]  ;;  %v66_v2 = vld [vmem:[#allocation2 + $0x8] sm:$0xff]  ;;  %vm98_vm0 = vcmask 1041409  }
  0x28   :  { %63 = vst [vmem:[#allocation7] sm:$0x3] %v275_v0  ;;  %64 = vst [vmem:[#allocation8] sm:$0x3] %v275_v0  ;;  %v158_v3 = vmul.f32 -1.442695, %v65_v1 }
  0x29   :  { %v159_v4 = vmul.f32 -1.442695, %v66_v2  ;;  %v67_v9 = vld [vmem:[#allocation5] sm:$0xff]  ;;  %v68_v10 = vld [vmem:[#allocation5 + $0x8] sm:$0xff]  ;;  %s276_s1 = smov [#allocation7]   ;;  %s277_s11 = smov [#allocation8]  }
  0x2a   :  { %167 = vpow2.f32 %v158_v3  ;;  %s130_s10 = sshll.u32 %s276_s1, 4  ;;  %s140_s12 = sshll.u32 %s277_s11, 4  ;;  %s131_s10 = int_to_ptr.vmem [resolvable:$true] %s130_s10  ;;  %s141_s12 = int_to_ptr.vmem [resolvable:$true] %s140_s12 }
  0x2b   :  { %169 = vpow2.f32 %v159_v4  ;;  %s219_s13 = scalar_lea.vmem %s131_s10, 32  ;;  %p224_p3 = scmp.lt.s32.totalorder %s131_s10, %s131_s10 }
  0x2c   :  { %p220_p2 = scmp.ne.s32.totalorder %s131_s10, %s219_s13  ;;  %p225_p4 = scmp.lt.s32.totalorder %s219_s13, %s219_s13 }
  0x2e   :  { %p226_p5 = por %p225_p4, %p224_p3 }
  0x2f   :  { %v81_v39 = vld [vmem:[#allocation7] sm:$0x3]  ;;  %v103_v41 = vld [vmem:[#allocation8] sm:$0x3] }
  0x30   :  { %p227_p6 = pnand %p226_p5, %p220_p2 }
  0x34   :  { %v168_v5 = vpop.eup %167 }
  0x35   :  { %v170_v6 = vpop.eup %169  ;;  %v75_v7 = vadd.f32 1.0, %v168_v5 }
  0x36   :  { %v76_v8 = vadd.f32 1.0, %v170_v6 }
  0x37   :  { %171 = vrcp.f32 %v75_v7 }
  0x38   :  { %173 = vrcp.f32 %v76_v8 }
  0x41   :  { %v172_v11 = vpop.eup %171 }
  0x42   :  { %v174_v12 = vpop.eup %173  ;;  %v82_v13 = vmul.f32 %v172_v11, %v67_v9  ;;  %v104_v14 = vadd.f32 %v172_v11, %v67_v9 }
  0x43   :  { %v83_v15 = vmul.f32 %v174_v12, %v68_v10  ;;  %v105_v16 = vadd.f32 %v174_v12, %v68_v10 }
  0x44   :  { %v84_v17 = vrot.slane %v82_v13, 4  ;;  %v106_v18 = vrot.slane %v104_v14, 4 }
  0x45   :  { %v90_v19 = vrot.slane %v83_v15, 4  ;;  %v112_v20 = vrot.slane %v105_v16, 4 }
  0x46   :  { %v85_v21 = vadd.f32 %v84_v17, %v82_v13  ;;  %v107_v22 = vadd.f32 %v106_v18, %v104_v14 }
  0x47   :  { %v91_v23 = vadd.f32 %v90_v19, %v83_v15  ;;  %v113_v24 = vadd.f32 %v112_v20, %v105_v16 }
  0x48   :  { %v86_v25 = vrot.slane %v85_v21, 2  ;;  %v108_v26 = vrot.slane %v107_v22, 2 }
  0x49   :  { %v92_v27 = vrot.slane %v91_v23, 2  ;;  %v114_v28 = vrot.slane %v113_v24, 2 }
  0x4a   :  { %v87_v29 = vadd.f32 %v86_v25, %v85_v21  ;;  %v109_v30 = vadd.f32 %v108_v26, %v107_v22 }
  0x4b   :  { %v93_v31 = vadd.f32 %v92_v27, %v91_v23  ;;  %v115_v32 = vadd.f32 %v114_v28, %v113_v24 }
  0x4c   :  { %v88_v33 = vrot.slane %v87_v29, 1  ;;  %v110_v34 = vrot.slane %v109_v30, 1 }
  0x4d   :  { %v94_v35 = vrot.slane %v93_v31, 1  ;;  %v116_v36 = vrot.slane %v115_v32, 1 }
  0x4e   :  { %v89_v37 = vadd.f32 %v88_v33, %v87_v29  ;;  %v111_v38 = vadd.f32 %v110_v34, %v109_v30 }
  0x4f   :  { %v95_v40 = vadd.f32 %v94_v35, %v93_v31  ;;  %v117_v42 = vadd.f32 %v116_v36, %v115_v32 }
  0x51   :  { %v99_v43 = vsel %vm98_vm0, %v95_v40, %v89_v37  ;;  %v120_v44 = vsel %vm98_vm0, %v117_v42, %v111_v38 }
  0x52   :  { %v101_v45 = vadd.f32 %v99_v43, %v81_v39  ;;  %v122_v46 = vadd.f32 %v120_v44, %v103_v41 }
  0x54   :  { %102 = vst [vmem:[#allocation7] sm:$0x3] %v101_v45  ;;  %123 = vst [vmem:[#allocation8] sm:$0x3] %v122_v46 }
  0x55   :  { %230 = shalt.err (!%p227_p6)
}
  0x56   :  { %s231_s16 = scalar_lea.hbm %s348_s2, 32 }
  0x57   :  { %p232_p7 = scmp.ne.s32.totalorder %s348_s2, %s231_s16  ;;  %p235_p8 = scmp.lt.u32.totalorder %s231_s16, %s348_s2 }
  0x59   :  { %p237_p9 = pnand %p235_p8, %p232_p7 }
  0x5b   :  { %240 = shalt.err (!%p237_p9)
}
  0x5c   :  { %133 = dma.vmem_to_hbm [thread:$0]  %s131_s10, 32, %s348_s2, [#allocation4]  }
  0x5d   :  { %s241_s23 = scalar_lea.vmem %s141_s12, 32  ;;  %p246_p11 = scmp.lt.s32.totalorder %s141_s12, %s141_s12 }
  0x5e   :  { %p242_p10 = scmp.ne.s32.totalorder %s141_s12, %s241_s23  ;;  %p247_p12 = scmp.lt.s32.totalorder %s241_s23, %s241_s23 }
  0x60   :  { %p248_p13 = por %p247_p12, %p246_p11 }
  0x62   :  { %p249_p0 = pnand %p248_p13, %p242_p10 }
  0x64   :  { %252 = shalt.err (!%p249_p0)
}
  0x65   :  { %s253_s26 = scalar_lea.hbm %s349_s3, 32 }
  0x66   :  { %p254_p1 = scmp.ne.s32.totalorder %s349_s3, %s253_s26  ;;  %p257_p2 = scmp.lt.u32.totalorder %s253_s26, %s349_s3 }
  0x68   :  { %p259_p3 = pnand %p257_p2, %p254_p1 }
  0x6a   :  { %262 = shalt.err (!%p259_p3)
}
  0x6b   :  { %143 = dma.vmem_to_hbm [thread:$0]  %s141_s12, 32, %s349_s3, [#allocation9]  }
  0x6c   :  { %267 = dma.done.wait [#allocation4], 32  }
  0x6d   :  { %268 = vsyncadd [#allocation4], 4294967264 }
  0x6e   :  { %269 = dma.done.wait [#allocation9], 32  }
  0x6f   :  { %270 = vsyncadd [#allocation9], 4294967264 }
  0x70   :  { %150 = vsyncpa [#allocation3], 1 }
  0x71   :  { %151 = vsyncpa [#allocation6], 1 }
  0x72   :  { %152 = vsyncpa [#allocation4], 1 }
  0x73   :  { %153 = vsyncpa [#allocation9], 1 }

</bundles_post_ra>
